<compile_context>
chip_gen: v7x
topology: tpu7x:2x2x1
jax: 0.10.0
libtpu: 0.0.40
codegen_flags: <defaults>
</compile_context>

<pallas_src>
import functools

import jax
import jax.numpy as jnp
from jax import lax
from jax.experimental import pallas as pl
from jax.experimental.pallas import tpu as pltpu


# ------------------------------ fused kernel -------------------------------

def _fused_kernel(xd_ref, deg_proj_ref, w_in_x_ref, b_in_ref, inv_cnt_ref,
                  true_x_ref, true_deg_ref,
                  w1_cls_ref, w1_x_ref, b1_ref, w2_ref, b2_ref, w3_ref, b3_ref,
                  out_ref,
                  class_sum_acc,
                  *, indim, num_classes):
    t = pl.program_id(0)

    @pl.when(t == 0)
    def _init():
        class_sum_acc[...] = jnp.zeros_like(class_sum_acc)

    # ---- phase 1: initial projection of this node tile -------------------
    xd = xd_ref[...]                                   # [TN, indim+2] f32
    tn = xd.shape[0]
    md = deg_proj_ref.shape[0]
    g = class_sum_acc.shape[0]

    x = xd[:, :indim]                                  # raw node features
    deg_i = xd[:, indim:indim + 1].astype(jnp.int32)   # clipped in-degree
    seg_i = xd[:, indim + 1:indim + 2].astype(jnp.int32)  # graph id, -1 = masked out

    # degree-embedding lookup as onehot @ (degree_emb @ W_deg)  (folded table)
    deg_oh = (deg_i == lax.broadcasted_iota(jnp.int32, (tn, md), 1)
              ).astype(jnp.float32)                    # [TN, MD]
    x_proj = (jnp.dot(deg_oh, deg_proj_ref[...], preferred_element_type=jnp.float32)
              + jnp.dot(x, w_in_x_ref[...], preferred_element_type=jnp.float32)
              + b_in_ref[...])                         # [TN, D]

    # TODO(synk): inner GNN `self.model(g)` treated as identity.
    emb = x_proj

    # ---- phase 2: masked mean-pool accumulation ---------------------------
    # node-major masked one-hot (target mask already folded: seg_i = -1 skips)
    seg_oh_t = (seg_i == lax.broadcasted_iota(jnp.int32, (tn, g), 1)
                ).astype(jnp.float32)                  # [TN, G]
    # 'ng,nd->gd' transposed contraction on the MXU
    class_sum_acc[...] += lax.dot_general(
        seg_oh_t, emb, (((0,), (0,)), ((), ())),
        preferred_element_type=jnp.float32)            # [G, D]

    # ---- phase 3: finalize on the last tile -------------------------------
    @pl.when(t == pl.num_programs(0) - 1)
    def _finalize():
        gc = out_ref.shape[0]
        # exact mean (1/count precomputed in the wrapper; matches torch, which
        # also produces inf/nan if a graph has zero target nodes)
        class_emb = class_sum_acc[...] * inv_cnt_ref[...]          # [G, D]

        # repeat_interleave(class_emb, C) as a selection matmul (no int div)
        row = lax.broadcasted_iota(jnp.int32, (gc, g), 0)
        col = lax.broadcasted_iota(jnp.int32, (gc, g), 1)
        rep_sel = ((row >= col * num_classes)
                   & (row < (col + 1) * num_classes)).astype(jnp.float32)
        rep_class = jnp.dot(rep_sel, class_emb,
                            preferred_element_type=jnp.float32)    # [GC, D]

        # true-node projection (initial projection of the GC gathered rows)
        t_deg_oh = (true_deg_ref[...] ==
                    lax.broadcasted_iota(jnp.int32, (gc, md), 1)).astype(jnp.float32)
        true_xproj = (jnp.dot(t_deg_oh, deg_proj_ref[...],
                              preferred_element_type=jnp.float32)
                      + jnp.dot(true_x_ref[...], w_in_x_ref[...],
                                preferred_element_type=jnp.float32)
                      + b_in_ref[...])                              # [GC, D]

        # fused 3-layer MLP; the layer-1 concat is a split matmul
        h = (jnp.dot(rep_class, w1_cls_ref[...], preferred_element_type=jnp.float32)
             + jnp.dot(true_xproj, w1_x_ref[...], preferred_element_type=jnp.float32)
             + b1_ref[...])
        h = jnp.maximum(h, 0.0)
        h = jnp.dot(h, w2_ref[...], preferred_element_type=jnp.float32) + b2_ref[...]
        h = jnp.maximum(h, 0.0)
        y = jnp.dot(h, w3_ref[...], preferred_element_type=jnp.float32) + b3_ref[...]
        out_ref[...] = y.astype(out_ref.dtype)          # lane-dense [GC, 128] store


# ------------------------------ model wrapper ------------------------------

def ada_pool_forward(params, x, edge_index, target_node_mask, true_node_idx,
                     batch, num_graphs, num_classes, *,
                     node_tile=512, vmem_limit_mb=48):
    # node_tile is a sublane (row) tile -> multiple of 8 suffices; 512+ amortizes
    # the ~0.35us/step pipeline overhead (review item #1).  Keep
    # vmem_limit_mb <= ~56 on v7x (64 MiB physical); 64-96 is fine on v5e/v6e.
    assert node_tile % 8 == 0, "node_tile must be a multiple of 8"
    n_nodes, indim = x.shape
    max_degree = params["degree_emb"].shape[0]
    outdim = params["in_proj_w"].shape[1]
    hid = params["mlp_w1"].shape[1]
    mid = params["mlp_w2"].shape[1]
    task_dim = params["mlp_w3"].shape[1]
    gc = num_graphs * num_classes
    assert true_node_idx.shape[0] == gc

    # --- tiny XLA glue -------------------------------------------------------
    # TODO(synk): in-degree via XLA scatter-add; move to a segment-sum kernel at real E.
    deg = jnp.zeros((n_nodes,), jnp.int32).at[edge_index[1]].add(1)
    deg = jnp.clip(deg, 0, max_degree - 1)

    mask_f = target_node_mask.astype(jnp.float32)
    # fold the target mask into the graph id: -1 == "do not pool this node"
    seg = jnp.where(target_node_mask, batch.astype(jnp.int32), -1)
    # exact per-graph counts and reciprocal (replaces in-kernel approx reciprocal)
    n_count = jax.ops.segment_sum(mask_f, batch, num_segments=num_graphs)
    inv_count = (1.0 / n_count).reshape(num_graphs, 1)   # inf/nan iff a graph has
                                                         # no target node (torch too)

    # fold degree_emb @ W_deg into one table; split in_proj / mlp_w1 (no concat)
    deg_proj = params["degree_emb"] @ params["in_proj_w"][:indim]      # [MD, D]
    w_in_x = params["in_proj_w"][indim:]                               # [indim, D]
    w1_cls = params["mlp_w1"][:outdim]
    w1_x = params["mlp_w1"][outdim:]

    # true-node raw rows (GC of them) gathered host-side; projected in finalize
    true_x = x[true_node_idx]                                          # [GC, indim]
    true_deg = deg[true_node_idx].reshape(gc, 1)                       # [GC, 1]

    # --- pack node stream: [x | deg | seg] as one f32 array ------------------
    n_pad = pl.cdiv(n_nodes, node_tile) * node_tile
    pad = n_pad - n_nodes
    x_p = jnp.pad(x, ((0, pad), (0, 0)))
    deg_p = jnp.pad(deg, (0, pad))                        # padded rows: deg=0
    seg_p = jnp.pad(seg, (0, pad), constant_values=-1)    # padded rows: never pooled
    xd = jnp.concatenate([x_p,
                          deg_p[:, None].astype(jnp.float32),
                          seg_p[:, None].astype(jnp.float32)], axis=1)  # [n_pad, indim+2]
    feat_w = indim + 2

    # lane-dense output: pad task_dim to 128 lanes, slice after the call
    out_pad = pl.cdiv(task_dim, 128) * 128
    w3p = jnp.pad(params["mlp_w3"], ((0, 0), (0, out_pad - task_dim)))
    b3p = jnp.pad(params["mlp_b3"], (0, out_pad - task_dim)).reshape(1, out_pad)

    num_tiles = n_pad // node_tile

    grid_spec = pltpu.PrefetchScalarGridSpec(
        num_scalar_prefetch=0,
        grid=(num_tiles,),
        in_specs=[
            pl.BlockSpec((node_tile, feat_w), lambda t: (t, 0)),       # packed x|deg|seg
            pl.BlockSpec((max_degree, outdim), lambda t: (0, 0)),      # folded degree table
            pl.BlockSpec((indim, outdim), lambda t: (0, 0)),           # w_in_x
            pl.BlockSpec((1, outdim), lambda t: (0, 0)),               # b_in
            pl.BlockSpec((num_graphs, 1), lambda t: (0, 0)),           # exact 1/count
            pl.BlockSpec((gc, indim), lambda t: (0, 0)),               # true-node raw x
            pl.BlockSpec((gc, 1), lambda t: (0, 0)),                   # true-node deg
            pl.BlockSpec((outdim, hid), lambda t: (0, 0)),             # w1_cls
            pl.BlockSpec((outdim, hid), lambda t: (0, 0)),             # w1_x
            pl.BlockSpec((1, hid), lambda t: (0, 0)),                  # b1
            pl.BlockSpec((hid, mid), lambda t: (0, 0)),                # w2
            pl.BlockSpec((1, mid), lambda t: (0, 0)),                  # b2
            pl.BlockSpec((mid, out_pad), lambda t: (0, 0)),            # w3 (padded)
            pl.BlockSpec((1, out_pad), lambda t: (0, 0)),              # b3 (padded)
        ],
        out_specs=pl.BlockSpec((gc, out_pad), lambda t: (0, 0)),
        scratch_shapes=[
            pltpu.VMEM((num_graphs, outdim), jnp.float32),   # class_sum accumulator
        ],
    )

    out_padded = pl.pallas_call(
        functools.partial(_fused_kernel, indim=indim, num_classes=num_classes),
        out_shape=jax.ShapeDtypeStruct((gc, out_pad), jnp.float32),
        grid_spec=grid_spec,
        compiler_params=pltpu.CompilerParams(
            # node axis carries the pooling reduction and the write-once output
            dimension_semantics=("arbitrary",),
            vmem_limit_bytes=int(vmem_limit_mb) * 1024 * 1024,
        ),
    )(xd, deg_proj, w_in_x, params["in_proj_b"].reshape(1, -1), inv_count,
      true_x, true_deg,
      w1_cls, w1_x, params["mlp_b1"].reshape(1, -1),
      params["mlp_w2"], params["mlp_b2"].reshape(1, -1),
      w3p, b3p)

    return out_padded[:, :task_dim]


def reference_forward(params, x, edge_index, target_node_mask, true_node_idx,
                      batch, num_graphs, num_classes):
    """Pure-JAX reference for correctness checking."""
    n_nodes = x.shape[0]
    max_degree = params["degree_emb"].shape[0]
    deg = jnp.zeros((n_nodes,), jnp.int32).at[edge_index[1]].add(1)
    deg = jnp.clip(deg, 0, max_degree - 1)
    xin = jnp.concatenate([params["degree_emb"][deg], x], axis=-1)
    x_proj = xin @ params["in_proj_w"] + params["in_proj_b"]
    emb = x_proj
    fm = target_node_mask.astype(jnp.float32)
    class_sum = jax.ops.segment_sum(fm[:, None] * emb, batch, num_graphs)
    n_count = jax.ops.segment_sum(fm, batch, num_graphs)
    class_emb = class_sum / n_count[:, None]
    rep = jnp.repeat(class_emb, num_classes, axis=0)
    h = jnp.concatenate([rep, x_proj[true_node_idx]], axis=-1)
    h = jnp.maximum(h @ params["mlp_w1"] + params["mlp_b1"], 0.0)
    h = jnp.maximum(h @ params["mlp_w2"] + params["mlp_b2"], 0.0)
    return h @ params["mlp_w3"] + params["mlp_b3"]


# ----------------------------------- main -----------------------------------

if __name__ == "__main__":
    N = 200            # total nodes (padded to 256 -> 2 node tiles of 128)
    E = 400            # edges
    INDIM = 8
    OUTDIM = 32
    TASK_DIM = 4
    MAX_DEGREE = 64
    NUM_GRAPHS = 2
    NUM_CLASSES = 2

    key = jax.random.PRNGKey(0)
    keys = jax.random.split(key, 12)

    params = {
        "degree_emb": jax.random.normal(keys[0], (MAX_DEGREE, INDIM), jnp.float32) * 0.1,
        "in_proj_w": jax.random.normal(keys[1], (2 * INDIM, OUTDIM), jnp.float32) * 0.1,
        "in_proj_b": jax.random.normal(keys[2], (OUTDIM,), jnp.float32) * 0.1,
        "mlp_w1": jax.random.normal(keys[3], (2 * OUTDIM, 2 * OUTDIM), jnp.float32) * 0.1,
        "mlp_b1": jax.random.normal(keys[4], (2 * OUTDIM,), jnp.float32) * 0.1,
        "mlp_w2": jax.random.normal(keys[5], (2 * OUTDIM, OUTDIM), jnp.float32) * 0.1,
        "mlp_b2": jax.random.normal(keys[6], (OUTDIM,), jnp.float32) * 0.1,
        "mlp_w3": jax.random.normal(keys[7], (OUTDIM, TASK_DIM), jnp.float32) * 0.1,
        "mlp_b3": jax.random.normal(keys[8], (TASK_DIM,), jnp.float32) * 0.1,
    }

    # Graph data: nodes 0..99 -> graph 0, nodes 100..199 -> graph 1.
    x = jax.random.normal(keys[9], (N, INDIM), jnp.float32)
    batch = jnp.concatenate([jnp.zeros(100, jnp.int32), jnp.ones(100, jnp.int32)])
    src = jax.random.randint(keys[10], (E,), 0, N, dtype=jnp.int32)
    dst = jax.random.randint(keys[11], (E,), 0, N, dtype=jnp.int32)
    edge_index = jnp.stack([src, dst], axis=0)                           # [2, E]

    # Target nodes (10 per graph) and "true" class nodes (NUM_CLASSES per graph,
    # graph-major, fixed-size index array -> jit-safe).
    target_node_mask = jnp.zeros((N,), bool).at[jnp.arange(10)].set(True)
    target_node_mask = target_node_mask.at[100 + jnp.arange(10)].set(True)
    true_node_idx = jnp.array([90, 95, 190, 195], jnp.int32)             # [G*C]

    # node_tile=128 here only to exercise the multi-tile accumulation path at
    # this tiny N; the production default is 512 (see wrapper signature).
    out = ada_pool_forward(params, x, edge_index, target_node_mask, true_node_idx,
                           batch, NUM_GRAPHS, NUM_CLASSES, node_tile=128)
    out = jax.block_until_ready(out)

    ref = reference_forward(params, x, edge_index, target_node_mask, true_node_idx,
                            batch, NUM_GRAPHS, NUM_CLASSES)
    assert out.shape == (NUM_GRAPHS * NUM_CLASSES, TASK_DIM)
    assert jnp.allclose(out, ref, atol=1e-3, rtol=1e-3), "mismatch vs. reference"

    print("KERNEL_OK")
</pallas_src>

<mosaic_0001>
module attributes {stable_mosaic.version = 11 : i64} {
  func.func @_fused_kernel(%arg0: i32, %arg1: memref<128x10xf32, #tpu.memory_space<vmem>>, %arg2: memref<64x32xf32, #tpu.memory_space<vmem>>, %arg3: memref<8x32xf32, #tpu.memory_space<vmem>>, %arg4: memref<1x32xf32, #tpu.memory_space<vmem>>, %arg5: memref<2x1xf32, #tpu.memory_space<vmem>>, %arg6: memref<4x8xf32, #tpu.memory_space<vmem>>, %arg7: memref<4x1xi32, #tpu.memory_space<vmem>>, %arg8: memref<32x64xf32, #tpu.memory_space<vmem>>, %arg9: memref<32x64xf32, #tpu.memory_space<vmem>>, %arg10: memref<1x64xf32, #tpu.memory_space<vmem>>, %arg11: memref<64x32xf32, #tpu.memory_space<vmem>>, %arg12: memref<1x32xf32, #tpu.memory_space<vmem>>, %arg13: memref<32x128xf32, #tpu.memory_space<vmem>>, %arg14: memref<1x128xf32, #tpu.memory_space<vmem>>, %arg15: memref<4x128xf32, #tpu.memory_space<vmem>>, %arg16: memref<2x32xf32, #tpu.memory_space<vmem>>) attributes {dimension_semantics = [#tpu.dimension_semantics<arbitrary>], iteration_bounds = array<i64: 2>, scalar_prefetch = 0 : i64, scratch_operands = 1 : i64, tpu.core_type = #tpu.core_type<tc>, window_params = [{transform_indices = @transform_0, window_bounds = array<i64: 128, 10>}, {pipeline_mode = #tpu.pipeline_mode<synchronous>, transform_indices = @transform_1, window_bounds = array<i64: 64, 32>}, {pipeline_mode = #tpu.pipeline_mode<synchronous>, transform_indices = @transform_2, window_bounds = array<i64: 8, 32>}, {pipeline_mode = #tpu.pipeline_mode<synchronous>, transform_indices = @transform_3, window_bounds = array<i64: 1, 32>}, {pipeline_mode = #tpu.pipeline_mode<synchronous>, transform_indices = @transform_4, window_bounds = array<i64: 2, 1>}, {pipeline_mode = #tpu.pipeline_mode<synchronous>, transform_indices = @transform_5, window_bounds = array<i64: 4, 8>}, {pipeline_mode = #tpu.pipeline_mode<synchronous>, transform_indices = @transform_6, window_bounds = array<i64: 4, 1>}, {pipeline_mode = #tpu.pipeline_mode<synchronous>, transform_indices = @transform_7, window_bounds = array<i64: 32, 64>}, {pipeline_mode = #tpu.pipeline_mode<synchronous>, transform_indices = @transform_8, window_bounds = array<i64: 32, 64>}, {pipeline_mode = #tpu.pipeline_mode<synchronous>, transform_indices = @transform_9, window_bounds = array<i64: 1, 64>}, {pipeline_mode = #tpu.pipeline_mode<synchronous>, transform_indices = @transform_10, window_bounds = array<i64: 64, 32>}, {pipeline_mode = #tpu.pipeline_mode<synchronous>, transform_indices = @transform_11, window_bounds = array<i64: 1, 32>}, {pipeline_mode = #tpu.pipeline_mode<synchronous>, transform_indices = @transform_12, window_bounds = array<i64: 32, 128>}, {pipeline_mode = #tpu.pipeline_mode<synchronous>, transform_indices = @transform_13, window_bounds = array<i64: 1, 128>}, {pipeline_mode = #tpu.pipeline_mode<synchronous>, transform_indices = @transform_14, window_bounds = array<i64: 4, 128>}]} {
    %c0_i32 = arith.constant 0 : i32
    %0 = arith.cmpi eq, %arg0, %c0_i32 : i32
    %1 = arith.extui %0 : i1 to i32
    %c0_i32_0 = arith.constant 0 : i32
    %2 = arith.cmpi ne, %1, %c0_i32_0 : i32
    scf.if %2 {
      %cst_15 = arith.constant 0.000000e+00 : f32
      %34 = vector.broadcast %cst_15 : f32 to vector<2x32xf32>
      %c0_16 = arith.constant 0 : index
      %c0_17 = arith.constant 0 : index
      %35 = vector.load %arg16[%c0_16, %c0_17] : memref<2x32xf32, #tpu.memory_space<vmem>>, vector<2x32xf32>
      tpu.vector_store %arg16[%c0_16, %c0_17], %34 {strides = array<i32>} : memref<2x32xf32, #tpu.memory_space<vmem>>, vector<2x32xf32>,
    } else {
    }
    %c0 = arith.constant 0 : index
    %c0_1 = arith.constant 0 : index
    %3 = vector.load %arg1[%c0, %c0_1] : memref<128x10xf32, #tpu.memory_space<vmem>>, vector<128x10xf32>
    %4 = vector.extract_strided_slice %3 {offsets = [0, 0], sizes = [128, 8], strides = [1, 1]} : vector<128x10xf32> to vector<128x8xf32>
    %5 = vector.extract_strided_slice %3 {offsets = [0, 8], sizes = [128, 1], strides = [1, 1]} : vector<128x10xf32> to vector<128x1xf32>
    %6 = arith.fptosi %5 : vector<128x1xf32> to vector<128x1xi32>
    %7 = vector.extract_strided_slice %3 {offsets = [0, 9], sizes = [128, 1], strides = [1, 1]} : vector<128x10xf32> to vector<128x1xf32>
    %8 = arith.fptosi %7 : vector<128x1xf32> to vector<128x1xi32>
    %9 = tpu.iota {dimensions = array<i32: 1>} : vector<128x64xi32>
    %10 = vector.broadcast %6 : vector<128x1xi32> to vector<128x64xi32>
    %11 = arith.cmpi eq, %10, %9 : vector<128x64xi32>
    %12 = arith.extui %11 : vector<128x64xi1> to vector<128x64xi32>
    %13 = arith.sitofp %12 : vector<128x64xi32> to vector<128x64xf32>
    %c0_2 = arith.constant 0 : index
    %c0_3 = arith.constant 0 : index
    %14 = vector.load %arg2[%c0_2, %c0_3] : memref<64x32xf32, #tpu.memory_space<vmem>>, vector<64x32xf32>
    %cst = arith.constant dense<0.000000e+00> : vector<128x32xf32>
    %15 = tpu.matmul %13, %14, %cst {dimension_numbers = #tpu.dot_dimension_numbers<[1], [0], [0], [1], [0, 0, 1, 1], [], []>} : vector<128x64xf32>, vector<64x32xf32>, vector<128x32xf32> -> vector<128x32xf32>
    %c0_4 = arith.constant 0 : index
    %c0_5 = arith.constant 0 : index
    %16 = vector.load %arg3[%c0_4, %c0_5] : memref<8x32xf32, #tpu.memory_space<vmem>>, vector<8x32xf32>
    %cst_6 = arith.constant dense<0.000000e+00> : vector<128x32xf32>
    %17 = tpu.matmul %4, %16, %cst_6 {dimension_numbers = #tpu.dot_dimension_numbers<[1], [0], [0], [1], [0, 0, 1, 1], [], []>} : vector<128x8xf32>, vector<8x32xf32>, vector<128x32xf32> -> vector<128x32xf32>
    %18 = arith.addf %15, %17 : vector<128x32xf32>
    %c0_7 = arith.constant 0 : index
    %c0_8 = arith.constant 0 : index
    %19 = vector.load %arg4[%c0_7, %c0_8] : memref<1x32xf32, #tpu.memory_space<vmem>>, vector<1x32xf32>
    %20 = vector.broadcast %19 : vector<1x32xf32> to vector<128x32xf32>
    %21 = arith.addf %18, %20 : vector<128x32xf32>
    %22 = tpu.iota {dimensions = array<i32: 1>} : vector<128x2xi32>
    %23 = vector.broadcast %8 : vector<128x1xi32> to vector<128x2xi32>
    %24 = arith.cmpi eq, %23, %22 : vector<128x2xi32>
    %25 = arith.extui %24 : vector<128x2xi1> to vector<128x2xi32>
    %26 = arith.sitofp %25 : vector<128x2xi32> to vector<128x2xf32>
    %c0_9 = arith.constant 0 : index
    %c0_10 = arith.constant 0 : index
    %27 = vector.load %arg16[%c0_9, %c0_10] : memref<2x32xf32, #tpu.memory_space<vmem>>, vector<2x32xf32>
    %cst_11 = arith.constant dense<0.000000e+00> : vector<2x32xf32>
    %28 = tpu.matmul %26, %21, %cst_11 {dimension_numbers = #tpu.dot_dimension_numbers<[0], [0], [1], [1], [0, 1, 1, 1], [], []>} : vector<128x2xf32>, vector<128x32xf32>, vector<2x32xf32> -> vector<2x32xf32>
    %29 = arith.addf %27, %28 : vector<2x32xf32>
    %c0_12 = arith.constant 0 : index
    %c0_13 = arith.constant 0 : index
    %30 = vector.load %arg16[%c0_12, %c0_13] : memref<2x32xf32, #tpu.memory_space<vmem>>, vector<2x32xf32>
    tpu.vector_store %arg16[%c0_12, %c0_13], %29 {strides = array<i32>} : memref<2x32xf32, #tpu.memory_space<vmem>>, vector<2x32xf32>,
    %c1_i32 = arith.constant 1 : i32
    %31 = arith.cmpi eq, %arg0, %c1_i32 : i32
    %32 = arith.extui %31 : i1 to i32
    %c0_i32_14 = arith.constant 0 : i32
    %33 = arith.cmpi ne, %32, %c0_i32_14 : i32
    scf.if %33 {
      %c0_15 = arith.constant 0 : index
      %c0_16 = arith.constant 0 : index
      %34 = vector.load %arg16[%c0_15, %c0_16] : memref<2x32xf32, #tpu.memory_space<vmem>>, vector<2x32xf32>
      %c0_17 = arith.constant 0 : index
      %c0_18 = arith.constant 0 : index
      %35 = vector.load %arg5[%c0_17, %c0_18] : memref<2x1xf32, #tpu.memory_space<vmem>>, vector<2x1xf32>
      %36 = vector.broadcast %35 : vector<2x1xf32> to vector<2x32xf32>
      %37 = arith.mulf %34, %36 : vector<2x32xf32>
      %38 = tpu.iota {dimensions = array<i32: 0>} : vector<4x2xi32>
      %39 = tpu.iota {dimensions = array<i32: 1>} : vector<4x2xi32>
      %c2_i32 = arith.constant 2 : i32
      %40 = vector.broadcast %c2_i32 : i32 to vector<4x2xi32>
      %41 = arith.muli %39, %40 : vector<4x2xi32>
      %42 = arith.cmpi sge, %38, %41 : vector<4x2xi32>
      %c1_i32_19 = arith.constant 1 : i32
      %43 = vector.broadcast %c1_i32_19 : i32 to vector<4x2xi32>
      %44 = arith.addi %39, %43 : vector<4x2xi32>
      %c2_i32_20 = arith.constant 2 : i32
      %45 = vector.broadcast %c2_i32_20 : i32 to vector<4x2xi32>
      %46 = arith.muli %44, %45 : vector<4x2xi32>
      %47 = arith.cmpi slt, %38, %46 : vector<4x2xi32>
      %48 = arith.andi %42, %47 : vector<4x2xi1>
      %49 = arith.extui %48 : vector<4x2xi1> to vector<4x2xi32>
      %50 = arith.sitofp %49 : vector<4x2xi32> to vector<4x2xf32>
      %cst_21 = arith.constant dense<0.000000e+00> : vector<4x32xf32>
      %51 = tpu.matmul %50, %37, %cst_21 {dimension_numbers = #tpu.dot_dimension_numbers<[1], [0], [0], [1], [0, 0, 1, 1], [], []>} : vector<4x2xf32>, vector<2x32xf32>, vector<4x32xf32> -> vector<4x32xf32>
      %c0_22 = arith.constant 0 : index
      %c0_23 = arith.constant 0 : index
      %52 = vector.load %arg7[%c0_22, %c0_23] : memref<4x1xi32, #tpu.memory_space<vmem>>, vector<4x1xi32>
      %53 = tpu.iota {dimensions = array<i32: 1>} : vector<4x64xi32>
      %54 = vector.broadcast %52 : vector<4x1xi32> to vector<4x64xi32>
      %55 = arith.cmpi eq, %54, %53 : vector<4x64xi32>
      %56 = arith.extui %55 : vector<4x64xi1> to vector<4x64xi32>
      %57 = arith.sitofp %56 : vector<4x64xi32> to vector<4x64xf32>
      %c0_24 = arith.constant 0 : index
      %c0_25 = arith.constant 0 : index
      %58 = vector.load %arg2[%c0_24, %c0_25] : memref<64x32xf32, #tpu.memory_space<vmem>>, vector<64x32xf32>
      %cst_26 = arith.constant dense<0.000000e+00> : vector<4x32xf32>
      %59 = tpu.matmul %57, %58, %cst_26 {dimension_numbers = #tpu.dot_dimension_numbers<[1], [0], [0], [1], [0, 0, 1, 1], [], []>} : vector<4x64xf32>, vector<64x32xf32>, vector<4x32xf32> -> vector<4x32xf32>
      %c0_27 = arith.constant 0 : index
      %c0_28 = arith.constant 0 : index
      %60 = vector.load %arg6[%c0_27, %c0_28] : memref<4x8xf32, #tpu.memory_space<vmem>>, vector<4x8xf32>
      %c0_29 = arith.constant 0 : index
      %c0_30 = arith.constant 0 : index
      %61 = vector.load %arg3[%c0_29, %c0_30] : memref<8x32xf32, #tpu.memory_space<vmem>>, vector<8x32xf32>
      %cst_31 = arith.constant dense<0.000000e+00> : vector<4x32xf32>
      %62 = tpu.matmul %60, %61, %cst_31 {dimension_numbers = #tpu.dot_dimension_numbers<[1], [0], [0], [1], [0, 0, 1, 1], [], []>} : vector<4x8xf32>, vector<8x32xf32>, vector<4x32xf32> -> vector<4x32xf32>
      %63 = arith.addf %59, %62 : vector<4x32xf32>
      %c0_32 = arith.constant 0 : index
      %c0_33 = arith.constant 0 : index
      %64 = vector.load %arg4[%c0_32, %c0_33] : memref<1x32xf32, #tpu.memory_space<vmem>>, vector<1x32xf32>
      %65 = vector.broadcast %64 : vector<1x32xf32> to vector<4x32xf32>
      %66 = arith.addf %63, %65 : vector<4x32xf32>
      %c0_34 = arith.constant 0 : index
      %c0_35 = arith.constant 0 : index
      %67 = vector.load %arg8[%c0_34, %c0_35] : memref<32x64xf32, #tpu.memory_space<vmem>>, vector<32x64xf32>
      %cst_36 = arith.constant dense<0.000000e+00> : vector<4x64xf32>
      %68 = tpu.matmul %51, %67, %cst_36 {dimension_numbers = #tpu.dot_dimension_numbers<[1], [0], [0], [1], [0, 0, 1, 1], [], []>} : vector<4x32xf32>, vector<32x64xf32>, vector<4x64xf32> -> vector<4x64xf32>
      %c0_37 = arith.constant 0 : index
      %c0_38 = arith.constant 0 : index
      %69 = vector.load %arg9[%c0_37, %c0_38] : memref<32x64xf32, #tpu.memory_space<vmem>>, vector<32x64xf32>
      %cst_39 = arith.constant dense<0.000000e+00> : vector<4x64xf32>
      %70 = tpu.matmul %66, %69, %cst_39 {dimension_numbers = #tpu.dot_dimension_numbers<[1], [0], [0], [1], [0, 0, 1, 1], [], []>} : vector<4x32xf32>, vector<32x64xf32>, vector<4x64xf32> -> vector<4x64xf32>
      %71 = arith.addf %68, %70 : vector<4x64xf32>
      %c0_40 = arith.constant 0 : index
      %c0_41 = arith.constant 0 : index
      %72 = vector.load %arg10[%c0_40, %c0_41] : memref<1x64xf32, #tpu.memory_space<vmem>>, vector<1x64xf32>
      %73 = vector.broadcast %72 : vector<1x64xf32> to vector<4x64xf32>
      %74 = arith.addf %71, %73 : vector<4x64xf32>
      %cst_42 = arith.constant 0.000000e+00 : f32
      %75 = vector.broadcast %cst_42 : f32 to vector<4x64xf32>
      %76 = arith.maximumf %74, %75 : vector<4x64xf32>
      %c0_43 = arith.constant 0 : index
      %c0_44 = arith.constant 0 : index
      %77 = vector.load %arg11[%c0_43, %c0_44] : memref<64x32xf32, #tpu.memory_space<vmem>>, vector<64x32xf32>
      %cst_45 = arith.constant dense<0.000000e+00> : vector<4x32xf32>
      %78 = tpu.matmul %76, %77, %cst_45 {dimension_numbers = #tpu.dot_dimension_numbers<[1], [0], [0], [1], [0, 0, 1, 1], [], []>} : vector<4x64xf32>, vector<64x32xf32>, vector<4x32xf32> -> vector<4x32xf32>
      %c0_46 = arith.constant 0 : index
      %c0_47 = arith.constant 0 : index
      %79 = vector.load %arg12[%c0_46, %c0_47] : memref<1x32xf32, #tpu.memory_space<vmem>>, vector<1x32xf32>
      %80 = vector.broadcast %79 : vector<1x32xf32> to vector<4x32xf32>
      %81 = arith.addf %78, %80 : vector<4x32xf32>
      %cst_48 = arith.constant 0.000000e+00 : f32
      %82 = vector.broadcast %cst_48 : f32 to vector<4x32xf32>
      %83 = arith.maximumf %81, %82 : vector<4x32xf32>
      %c0_49 = arith.constant 0 : index
      %c0_50 = arith.constant 0 : index
      %84 = vector.load %arg13[%c0_49, %c0_50] : memref<32x128xf32, #tpu.memory_space<vmem>>, vector<32x128xf32>
      %cst_51 = arith.constant dense<0.000000e+00> : vector<4x128xf32>
      %85 = tpu.matmul %83, %84, %cst_51 {dimension_numbers = #tpu.dot_dimension_numbers<[1], [0], [0], [1], [0, 0, 1, 1], [], []>} : vector<4x32xf32>, vector<32x128xf32>, vector<4x128xf32> -> vector<4x128xf32>
      %c0_52 = arith.constant 0 : index
      %c0_53 = arith.constant 0 : index
      %86 = vector.load %arg14[%c0_52, %c0_53] : memref<1x128xf32, #tpu.memory_space<vmem>>, vector<1x128xf32>
      %87 = vector.broadcast %86 : vector<1x128xf32> to vector<4x128xf32>
      %88 = arith.addf %85, %87 : vector<4x128xf32>
      %c0_54 = arith.constant 0 : index
      %c0_55 = arith.constant 0 : index
      %89 = vector.load %arg15[%c0_54, %c0_55] : memref<4x128xf32, #tpu.memory_space<vmem>>, vector<4x128xf32>
      tpu.vector_store %arg15[%c0_54, %c0_55], %88 {strides = array<i32>} : memref<4x128xf32, #tpu.memory_space<vmem>>, vector<4x128xf32>,
    } else {
    }
    return
  }
  func.func @transform_0(%arg0: i32) -> (i32, i32) {
    %c0_i32 = arith.constant 0 : i32
    %c0_i32_0 = arith.constant 0 : i32
    return %arg0, %c0_i32 : i32, i32
  }
  func.func @transform_1(%arg0: i32) -> (i32, i32) {
    %c0_i32 = arith.constant 0 : i32
    %c0_i32_0 = arith.constant 0 : i32
    %c0_i32_1 = arith.constant 0 : i32
    return %c0_i32, %c0_i32_0 : i32, i32
  }
  func.func @transform_2(%arg0: i32) -> (i32, i32) {
    %c0_i32 = arith.constant 0 : i32
    %c0_i32_0 = arith.constant 0 : i32
    %c0_i32_1 = arith.constant 0 : i32
    return %c0_i32, %c0_i32_0 : i32, i32
  }
  func.func @transform_3(%arg0: i32) -> (i32, i32) {
    %c0_i32 = arith.constant 0 : i32
    %c0_i32_0 = arith.constant 0 : i32
    %c0_i32_1 = arith.constant 0 : i32
    return %c0_i32, %c0_i32_0 : i32, i32
  }
  func.func @transform_4(%arg0: i32) -> (i32, i32) {
    %c0_i32 = arith.constant 0 : i32
    %c0_i32_0 = arith.constant 0 : i32
    %c0_i32_1 = arith.constant 0 : i32
    return %c0_i32, %c0_i32_0 : i32, i32
  }
  func.func @transform_5(%arg0: i32) -> (i32, i32) {
    %c0_i32 = arith.constant 0 : i32
    %c0_i32_0 = arith.constant 0 : i32
    %c0_i32_1 = arith.constant 0 : i32
    return %c0_i32, %c0_i32_0 : i32, i32
  }
  func.func @transform_6(%arg0: i32) -> (i32, i32) {
    %c0_i32 = arith.constant 0 : i32
    %c0_i32_0 = arith.constant 0 : i32
    %c0_i32_1 = arith.constant 0 : i32
    return %c0_i32, %c0_i32_0 : i32, i32
  }
  func.func @transform_7(%arg0: i32) -> (i32, i32) {
    %c0_i32 = arith.constant 0 : i32
    %c0_i32_0 = arith.constant 0 : i32
    %c0_i32_1 = arith.constant 0 : i32
    return %c0_i32, %c0_i32_0 : i32, i32
  }
  func.func @transform_8(%arg0: i32) -> (i32, i32) {
    %c0_i32 = arith.constant 0 : i32
    %c0_i32_0 = arith.constant 0 : i32
    %c0_i32_1 = arith.constant 0 : i32
    return %c0_i32, %c0_i32_0 : i32, i32
  }
  func.func @transform_9(%arg0: i32) -> (i32, i32) {
    %c0_i32 = arith.constant 0 : i32
    %c0_i32_0 = arith.constant 0 : i32
    %c0_i32_1 = arith.constant 0 : i32
    return %c0_i32, %c0_i32_0 : i32, i32
  }
  func.func @transform_10(%arg0: i32) -> (i32, i32) {
    %c0_i32 = arith.constant 0 : i32
    %c0_i32_0 = arith.constant 0 : i32
    %c0_i32_1 = arith.constant 0 : i32
    return %c0_i32, %c0_i32_0 : i32, i32
  }
  func.func @transform_11(%arg0: i32) -> (i32, i32) {
    %c0_i32 = arith.constant 0 : i32
    %c0_i32_0 = arith.constant 0 : i32
    %c0_i32_1 = arith.constant 0 : i32
    return %c0_i32, %c0_i32_0 : i32, i32
  }
  func.func @transform_12(%arg0: i32) -> (i32, i32) {
    %c0_i32 = arith.constant 0 : i32
    %c0_i32_0 = arith.constant 0 : i32
    %c0_i32_1 = arith.constant 0 : i32
    return %c0_i32, %c0_i32_0 : i32, i32
  }
  func.func @transform_13(%arg0: i32) -> (i32, i32) {
    %c0_i32 = arith.constant 0 : i32
    %c0_i32_0 = arith.constant 0 : i32
    %c0_i32_1 = arith.constant 0 : i32
    return %c0_i32, %c0_i32_0 : i32, i32
  }
  func.func @transform_14(%arg0: i32) -> (i32, i32) {
    %c0_i32 = arith.constant 0 : i32
    %c0_i32_0 = arith.constant 0 : i32
    %c0_i32_1 = arith.constant 0 : i32
    return %c0_i32, %c0_i32_0 : i32, i32
  }
}

</mosaic_0001>

<bundles_post_ra>
// kernel: tpu_custom_call.1
= control target key start
LH: loop header
LB: loop body
LE: loop exit
PB: predicated region body
PF: predicated region fallthrough
CT: control target
= control target key end

     0   :  { %19 = vsyncpa [#allocation4], 0  ;;  %s2521_s29 = smov 0   ;;  %s2941_s0 = inlined_call_operand.vmem [shape: f32[256,10], index: 0, kind: input, shape index: {}]   ;;  %s2942_s1 = inlined_call_operand.vmem [shape: f32[64,32], index: 1, kind: input, shape index: {}]   ;;  %s2943_s2 = inlined_call_operand.vmem [shape: f32[8,32], index: 2, kind: input, shape index: {}]   ;;  %s2944_s3 = inlined_call_operand.vmem [shape: f32[1,32], index: 3, kind: input, shape index: {}]   ;;  %s2945_s4 = inlined_call_operand.vmem [shape: f32[2,1], index: 4, kind: input, shape index: {}]   ;;  %s2946_s5 = inlined_call_operand.vmem [shape: f32[4,8], index: 5, kind: input, shape index: {}]   ;;  %s2947_s6 = inlined_call_operand.vmem [shape: s32[4,1], index: 6, kind: input, shape index: {}]   ;;  %s2948_s7 = inlined_call_operand.vmem [shape: f32[32,64], index: 7, kind: input, shape index: {}]   ;;  %s2949_s8 = inlined_call_operand.vmem [shape: f32[32,64], index: 8, kind: input, shape index: {}]   ;;  %s2950_s9 = inlined_call_operand.vmem [shape: f32[1,64], index: 9, kind: input, shape index: {}]   ;;  %s2951_s10 = inlined_call_operand.vmem [shape: f32[64,32], index: 10, kind: input, shape index: {}]   ;;  %s2952_s11 = inlined_call_operand.vmem [shape: f32[1,32], index: 11, kind: input, shape index: {}]   ;;  %s2953_s12 = inlined_call_operand.vmem [shape: f32[32,128], index: 12, kind: input, shape index: {}]   ;;  %s2954_s13 = inlined_call_operand.vmem [shape: f32[1,128], index: 13, kind: input, shape index: {}]   ;;  %s2955_s14 = inlined_call_operand.hbm [shape: f32[4,128], index: 14, kind: output, shape index: {}]  }
   0x1 LB: > { %s2527_s30 = sadd.s32 4294967295, %s2433_s29   ;;  %p1872_p0 = scmp.ge.s32.totalorder %s2433_s29, 1  ;;  %s2433_s29 = sphi %s2521_s29, %s25_s29  }
   0x2   : > { %p409_p1 = scmp.lt.s32.totalorder %s2433_s29, 3 }
   0x4   : > { %p410_p2 = pnand %p1872_p0, %p409_p1 }
   0x5   : > { %s1873_s15 = sshll.u32 (!%p410_p2), %s2527_s30, 4  ;;  %p1875_p4 = scmp.ne.s32.totalorder (!%p410_p2), %s2527_s30, 0 }
   0x6   : > { %413 = sbr.rel (%p410_p2) target bundleno = 1536 (0x600), region = 76  ;;  %p451_p3 = scmp.lt.s32.totalorder (!%p410_p2), %s1873_s15, 31 }
   0xd   : > { %s2957_s15 = smov (!%p451_p3, %s1873_s15), 31  ;;  %459 = sbr.rel (%p1875_p4) target bundleno = 20 (0x14), region = 80 }
   0xe   : > { %s1874_s16 = sshll.u32 %s2957_s15, 3  ;;  %vm460_vm0 = vcmask (!%p1875_p4), 254976   ;;  %v2435_v0 = vmov (!%p1875_p4), 0.0  }
   0xf   : > { %s2535_s19 = scalar_lea.vmem %s2941_s0, %s1874_s16  ;;  %461 = vst.msk [vmem:[#allocation2] sm:$0x3] (!%p1875_p4), %vm460_vm0, %v2435_v0 }
  0x14 PF: > { %v464_v1 = vld [vmem:[%s2535_s19 + $0x10] sm:$0xff]  ;;  %v462_v2 = vld [vmem:[%s2535_s19] sm:$0xff]  ;;  %v2541_v3 = vld [vmem:[%s2535_s19 + $0x18] sm:$0xff]  ;;  %v2436_v4 = vmov 8   ;;  %vm601_vm1 = vcmask 64512   ;;  %v2437_v63 = vmov 9   ;;  %v494_v0 = vlaneseq }
  0x15   : > { %2393 = vset.pattern.permute.xlu1 %v2436_v4  ;;  %2392 = vset.pattern.permute.xlu0 %v2436_v4  ;;  %v2339_v5 = vtrunc.f32 %v464_v1  ;;  %v2335_v6 = vtrunc.f32 %v462_v2  ;;  %v2341_v7 = vtrunc.f32 %v2541_v3  ;;  %v463_v8 = vld [vmem:[%s2535_s19 + $0x8] sm:$0xff]  ;;  %v466_v11 = vld [vmem:[%s2535_s19 + $0x20] sm:$0xff]  ;;  %v2561_v18 = vld [vmem:[%s2535_s19 + $0x38] sm:$0xff]  ;;  %vm795_vm2 = vcmask 523264   ;;  %p1941_p5 = scmp.ne.s32.totalorder %s2527_s30, 1 }
  0x16   : > { %v2337_v9 = vtrunc.f32 %v463_v8  ;;  %v2546_v10 = vld [vmem:[%s2535_s19 + $0x28] sm:$0xff]  ;;  %v2343_v17 = vtrunc.f32 %v466_v11  ;;  %v468_v19 = vld [vmem:[%s2535_s19 + $0x30] sm:$0xff]  ;;  %v592_v20 = vld [vmem:[%s2942_s1] sm:$0xff]  ;;  %v2349_v24 = vtrunc.f32 %v2561_v18  ;;  %2057 = vmatprep.mubr.msk.f32.mxu1 %vm601_vm1, %v462_v2  ;;  %v2438_v4 = vmov 0.0  }
  0x17   : > { %v2549_v12 = vcvt.f32.s32 %v2339_v5  ;;  %v2551_v13 = vcvt.f32.s32 %v2335_v6  ;;  %v2555_v14 = vcvt.f32.s32 %v2341_v7  ;;  %v2345_v16 = vtrunc.f32 %v2546_v10  ;;  %v593_v21 = vld [vmem:[%s2942_s1 + $0x8] sm:$0xff]  ;;  %v594_v22 = vld [vmem:[%s2942_s1 + $0x10] sm:$0xff]  ;;  %v595_v23 = vld [vmem:[%s2942_s1 + $0x18] sm:$0xff] }
  0x18   : > { %v2557_v15 = vcvt.f32.s32 %v2337_v9  ;;  %v600_v25 = vld [vmem:[%s2943_s2] sm:$0xff]  ;;  %v2584_v27 = vcvt.f32.s32 %v2343_v17  ;;  %v2347_v28 = vtrunc.f32 %v468_v19  ;;  %v2237_v29 = vpack.c.bf16 %v593_v21, %v592_v20  ;;  %v2587_v30 = vld [vmem:[%s2535_s19 + $0x48] sm:$0xff]  ;;  %v473_v39 = vld [vmem:[%s2535_s19 + $0x58] sm:$0xff] }
  0x19   : > { %503 = vperm.xlu1 %2393, %v2549_v12   ;;  %497 = vperm.xlu0 %2392, %v2551_v13   ;;  %v2582_v26 = vcvt.f32.s32 %v2345_v16  ;;  %v470_v31 = vld [vmem:[%s2535_s19 + $0x40] sm:$0xff]  ;;  %v2241_v32 = vpack.c.bf16 %v595_v23, %v594_v22  ;;  %v597_v34 = vld [vmem:[%s2942_s1 + $0x28] sm:$0xff]  ;;  %v2599_v35 = vcvt.f32.s32 %v2349_v24  ;;  %v2353_v37 = vtrunc.f32 %v2587_v30  ;;  %v472_v40 = vld [vmem:[%s2535_s19 + $0x50] sm:$0xff] }
  0x1a   : > { %2055 = vmatprep.subr.mxu1 %v600_v25  ;;  %2238 = vmatprep.subr.bf16.mxu0 %v2237_v29  ;;  %v596_v33 = vld [vmem:[%s2942_s1 + $0x20] sm:$0xff]  ;;  %v2601_v36 = vcvt.f32.s32 %v2347_v28  ;;  %v2351_v38 = vtrunc.f32 %v470_v31  ;;  %v598_v42 = vld [vmem:[%s2942_s1 + $0x30] sm:$0xff]  ;;  %v599_v43 = vld [vmem:[%s2942_s1 + $0x38] sm:$0xff]  ;;  %v2357_v46 = vtrunc.f32 %v473_v39  ;;  %v2355_v47 = vtrunc.f32 %v472_v40 }
  0x1b   : > { %2056 = vmatpush3.msra.mxu1 %v600_v25  ;;  %2240 = vmatpush3.bf16.msra.mxu0 %v2237_v29  ;;  %v2245_v41 = vpack.c.bf16 %v597_v34, %v596_v33  ;;  %v2354_v44 = vcvt.f32.s32 %v2353_v37  ;;  %v475_v48 = vld [vmem:[%s2535_s19 + $0x68] sm:$0xff]  ;;  %v474_v49 = vld [vmem:[%s2535_s19 + $0x60] sm:$0xff]  ;;  %v2249_v50 = vpack.c.bf16 %v599_v43, %v598_v42  ;;  %v477_v55 = vld [vmem:[%s2535_s19 + $0x78] sm:$0xff] }
  0x1c   : > { %2242 = vmatprep.subr.bf16.mxu0 %v2241_v32  ;;  %2058 = vmatmul.mubr.msk.f32.vlgmr.msra.gmra.mrb[0].mxu1 %vm601_vm1, %v463_v8  ;;  %v2352_v45 = vcvt.f32.s32 %v2351_v38  ;;  %v2358_v51 = vcvt.f32.s32 %v2357_v46  ;;  %v2356_v52 = vcvt.f32.s32 %v2355_v47  ;;  %v2361_v53 = vtrunc.f32 %v475_v48  ;;  %v476_v56 = vld [vmem:[%s2535_s19 + $0x70] sm:$0xff] }
  0x1d   : > { %506 = vperm.xlu1 %2393, %v2555_v14   ;;  %500 = vperm.xlu0 %2392, %v2557_v15   ;;  %v2359_v54 = vtrunc.f32 %v474_v49  ;;  %v2365_v59 = vtrunc.f32 %v477_v55  ;;  %v2363_v60 = vtrunc.f32 %v476_v56 }
  0x1e   : > { %2060 = vmatprep.mubr.msk.f32.mxu1 %vm601_vm1, %v464_v1  ;;  %v2362_v57 = vcvt.f32.s32 %v2361_v53  ;;  %v2646_v1 = vand.u32 127, %v494_v0 }
  0x1f   : > { %2244 = vmatpush3.bf16.msra.mxu0 %v2241_v32  ;;  %v2360_v58 = vcvt.f32.s32 %v2359_v54  ;;  %v2366_v61 = vcvt.f32.s32 %v2365_v59  ;;  %v2364_v62 = vcvt.f32.s32 %v2363_v60 }
  0x20   : > { %2246 = vmatprep.subr.bf16.mxu0 %v2245_v41  ;;  %2061 = vmatmul.mubr.msk.f32.gmra.mrb[2].mxu1 %vm601_vm1, %v2541_v3 }
  0x21   : > { %512 = vperm.xlu1 %2393, %v2582_v26   ;;  %509 = vperm.xlu0 %2392, %v2584_v27  }
  0x22   : > { %2063 = vmatprep.mubr.msk.f32.mxu1 %vm601_vm1, %v466_v11 }
  0x23   : > { %2248 = vmatpush3.bf16.msra.mxu0 %v2245_v41 }
  0x24   : > { %2250 = vmatprep.subr.bf16.mxu0 %v2249_v50  ;;  %2064 = vmatmul.mubr.msk.f32.gmra.mrb[4].mxu1 %vm601_vm1, %v2546_v10 }
  0x25   : > { %518 = vperm.xlu1 %2393, %v2599_v35   ;;  %515 = vperm.xlu0 %2392, %v2601_v36  }
  0x26   : > { %2066 = vmatprep.mubr.msk.f32.mxu1 %vm601_vm1, %v468_v19 }
  0x27   : > { %2252 = vmatpush3.bf16.msra.mxu0 %v2249_v50 }
  0x28   : > { %2067 = vmatmul.mubr.msk.f32.gmra.mrb[6].mxu1 %vm601_vm1, %v2561_v18 }
  0x29   : > { %524 = vperm.xlu1 %2393, %v2354_v44   ;;  %521 = vperm.xlu0 %2392, %v2352_v45  }
  0x2a   : > { %2069 = vmatprep.mubr.msk.f32.mxu1 %vm601_vm1, %v470_v31 }
  0x2c   : > { %2070 = vmatmul.mubr.msk.f32.gmra.mrb[8].mxu1 %vm601_vm1, %v2587_v30 }
  0x2d   : > { %530 = vperm.xlu1 %2393, %v2358_v51   ;;  %527 = vperm.xlu0 %2392, %v2356_v52  }
  0x2e   : > { %2072 = vmatprep.mubr.msk.f32.mxu1 %vm601_vm1, %v472_v40 }
  0x30   : > { %2073 = vmatmul.mubr.msk.f32.gmra.mrb[10].mxu1 %vm601_vm1, %v473_v39 }
  0x31   : > { %536 = vperm.xlu1 %2393, %v2362_v57   ;;  %533 = vperm.xlu0 %2392, %v2360_v58  }
  0x32   : > { %2075 = vmatprep.mubr.msk.f32.mxu1 %vm601_vm1, %v474_v49 }
  0x34   : > { %2076 = vmatmul.mubr.msk.f32.gmra.mrb[12].mxu1 %vm601_vm1, %v475_v48 }
  0x35   : > { %542 = vperm.xlu1 %2393, %v2366_v61   ;;  %539 = vperm.xlu0 %2392, %v2364_v62  }
  0x36   : > { %2078 = vmatprep.mubr.msk.f32.mxu1 %vm601_vm1, %v476_v56 }
  0x38   : > { %2079 = vmatmul.mubr.msk.f32.gmra.mrb[14].mxu1 %vm601_vm1, %v477_v55 }
  0x39   : > { %2394 = vset.pattern.permute.xlu0 %v2437_v63  ;;  %2395 = vset.pattern.permute.xlu1 %v2437_v63 }
  0x3a   : > { %1013 = vperm.xlu0 %2394, %v2551_v13   ;;  %1016 = vperm.xlu1 %2395, %v2557_v15  }
  0x3e   : > { %1019 = vperm.xlu1 %2395, %v2549_v12   ;;  %1022 = vperm.xlu0 %2394, %v2555_v14  }
  0x42   : > { %1025 = vperm.xlu1 %2395, %v2584_v27   ;;  %1028 = vperm.xlu0 %2394, %v2582_v26  }
  0x46   : > { %1031 = vperm.xlu1 %2395, %v2601_v36   ;;  %1034 = vperm.xlu0 %2394, %v2599_v35  }
  0x4a   : > { %1037 = vperm.xlu1 %2395, %v2352_v45   ;;  %1040 = vperm.xlu0 %2394, %v2354_v44  }
  0x4e   : > { %1043 = vperm.xlu1 %2395, %v2356_v52   ;;  %1046 = vperm.xlu0 %2394, %v2358_v51  }
  0x52   : > { %1049 = vperm.xlu1 %2395, %v2360_v58   ;;  %1052 = vperm.xlu0 %2394, %v2362_v57  }
  0x56   : > { %1055 = vperm.xlu1 %2395, %v2364_v62   ;;  %1058 = vperm.xlu0 %2394, %v2366_v61  }
  0x98   : > { %v504_v2 = vpop.permute.xlu1 %503  ;;  %v498_v3 = vpop.permute.xlu0 %497 }
  0x99   : > { %vm544_vm3 = vcmp.eq.s32.totalorder %v498_v3, %v2646_v1  ;;  %vm546_vm4 = vcmp.eq.s32.totalorder %v504_v2, %v2646_v1 }
  0x9a   : > { %v1876_v5 = vsel %vm544_vm3, 1.0, %v2438_v4  ;;  %v1878_v8 = vsel %vm546_vm4, 1.0, %v2438_v4 }
  0x9b   : > { %2097 = vmatprep.mubr.msk.f32.mxu0 %vm795_vm2, %v1876_v5 }
  0x9c   : > { %v507_v6 = vpop.permute.xlu1 %506  ;;  %v501_v7 = vpop.permute.xlu0 %500 }
  0x9d   : > { %vm545_vm5 = vcmp.eq.s32.totalorder %v501_v7, %v2646_v1  ;;  %vm547_vm6 = vcmp.eq.s32.totalorder %v507_v6, %v2646_v1 }
  0x9e   : > { %v1877_v9 = vsel %vm545_vm5, 1.0, %v2438_v4  ;;  %v1879_v12 = vsel %vm547_vm6, 1.0, %v2438_v4 }
  0x9f   : > { %2098 = vmatmul.mubr.msk.f32.vlgmr.msra.gmra.mrb[0].mxu0 %vm795_vm2, %v1877_v9  ;;  %v2439_v9 = vmov 0.0|0.0  }
  0xa0   : > { %v513_v10 = vpop.permute.xlu1 %512  ;;  %2100 = vmatprep.mubr.msk.f32.mxu0 %vm795_vm2, %v1878_v8  ;;  %v510_v11 = vpop.permute.xlu0 %509  ;;  %2253 = vmatprep.subr.bf16.mxu1 %v2439_v9 }
  0xa1   : > { %vm548_vm7 = vcmp.eq.s32.totalorder %v510_v11, %v2646_v1  ;;  %vm549_vm8 = vcmp.eq.s32.totalorder %v513_v10, %v2646_v1 }
  0xa2   : > { %v1880_v13 = vsel %vm548_vm7, 1.0, %v2438_v4  ;;  %v1881_v16 = vsel %vm549_vm8, 1.0, %v2438_v4 }
  0xa3   : > { %2101 = vmatmul.mubr.msk.f32.gmra.mrb[2].mxu0 %vm795_vm2, %v1879_v12 }
  0xa4   : > { %v519_v14 = vpop.permute.xlu1 %518  ;;  %2103 = vmatprep.mubr.msk.f32.mxu0 %vm795_vm2, %v1880_v13  ;;  %v516_v15 = vpop.permute.xlu0 %515 }
  0xa5   : > { %vm550_vm9 = vcmp.eq.s32.totalorder %v516_v15, %v2646_v1  ;;  %vm551_vm10 = vcmp.eq.s32.totalorder %v519_v14, %v2646_v1 }
  0xa6   : > { %v1882_v17 = vsel %vm550_vm9, 1.0, %v2438_v4  ;;  %v1883_v20 = vsel %vm551_vm10, 1.0, %v2438_v4 }
  0xa7   : > { %2104 = vmatmul.mubr.msk.f32.gmra.mrb[4].mxu0 %vm795_vm2, %v1881_v16 }
  0xa8   : > { %v525_v18 = vpop.permute.xlu1 %524  ;;  %2106 = vmatprep.mubr.msk.f32.mxu0 %vm795_vm2, %v1882_v17  ;;  %v522_v19 = vpop.permute.xlu0 %521 }
  0xa9   : > { %vm552_vm11 = vcmp.eq.s32.totalorder %v522_v19, %v2646_v1  ;;  %vm553_vm12 = vcmp.eq.s32.totalorder %v525_v18, %v2646_v1 }
  0xaa   : > { %v1884_v21 = vsel %vm552_vm11, 1.0, %v2438_v4  ;;  %v1885_v24 = vsel %vm553_vm12, 1.0, %v2438_v4 }
  0xab   : > { %2107 = vmatmul.mubr.msk.f32.gmra.mrb[6].mxu0 %vm795_vm2, %v1883_v20 }
  0xac   : > { %v531_v22 = vpop.permute.xlu1 %530  ;;  %2109 = vmatprep.mubr.msk.f32.mxu0 %vm795_vm2, %v1884_v21  ;;  %v528_v23 = vpop.permute.xlu0 %527 }
  0xad   : > { %vm554_vm13 = vcmp.eq.s32.totalorder %v528_v23, %v2646_v1  ;;  %vm555_vm14 = vcmp.eq.s32.totalorder %v531_v22, %v2646_v1 }
  0xae   : > { %v1886_v25 = vsel %vm554_vm13, 1.0, %v2438_v4  ;;  %v1887_v28 = vsel %vm555_vm14, 1.0, %v2438_v4 }
  0xaf   : > { %2110 = vmatmul.mubr.msk.f32.gmra.mrb[8].mxu0 %vm795_vm2, %v1885_v24  ;;  %v2737_v24 = vld [vmem:[%s2944_s3] ss:$0 sm:$0xff] }
  0xb0   : > { %v537_v26 = vpop.permute.xlu1 %536  ;;  %2112 = vmatprep.mubr.msk.f32.mxu0 %vm795_vm2, %v1886_v25  ;;  %v534_v27 = vpop.permute.xlu0 %533 }
  0xb1   : > { %vm556_vm15 = vcmp.eq.s32.totalorder %v534_v27, %v2646_v1  ;;  %vm557_vm0 = vcmp.eq.s32.totalorder %v537_v26, %v2646_v1 }
  0xb2   : > { %v1888_v29 = vsel %vm556_vm15, 1.0, %v2438_v4  ;;  %v1889_v32 = vsel %vm557_vm0, 1.0, %v2438_v4 }
  0xb3   : > { %2113 = vmatmul.mubr.msk.f32.gmra.mrb[10].mxu0 %vm795_vm2, %v1887_v28 }
  0xb4   : > { %v543_v30 = vpop.permute.xlu1 %542  ;;  %2115 = vmatprep.mubr.msk.f32.mxu0 %vm795_vm2, %v1888_v29  ;;  %v540_v31 = vpop.permute.xlu0 %539 }
  0xb5   : > { %vm558_vm3 = vcmp.eq.s32.totalorder %v540_v31, %v2646_v1  ;;  %vm559_vm4 = vcmp.eq.s32.totalorder %v543_v30, %v2646_v1 }
  0xb6   : > { %v1890_v33 = vsel %vm558_vm3, 1.0, %v2438_v4  ;;  %v1891_v36 = vsel %vm559_vm4, 1.0, %v2438_v4 }
  0xb7   : > { %2116 = vmatmul.mubr.msk.f32.gmra.mrb[12].mxu0 %vm795_vm2, %v1889_v32 }
  0xb8   : > { %2118 = vmatprep.mubr.msk.f32.mxu0 %vm795_vm2, %v1890_v33 }
  0xb9   : > { %v1014_v34 = vpop.permute.xlu0 %1013  ;;  %v1017_v35 = vpop.permute.xlu1 %1016 }
  0xba   : > { %vm1060_vm5 = vcmp.eq.s32.totalorder %v1014_v34, %v2646_v1  ;;  %vm1061_vm6 = vcmp.eq.s32.totalorder %v1017_v35, %v2646_v1 }
  0xbb   : > { %2119 = vmatmul.mubr.msk.f32.gmra.mrb[14].mxu0 %vm795_vm2, %v1891_v36  ;;  %v1925_v37 = vsel %vm1060_vm5, 1.0, %v2438_v4  ;;  %v1926_v38 = vsel %vm1061_vm6, 1.0, %v2438_v4 }
  0xbc   : > { %1109 = vxpose.xlu1.b32.start [1/16] (narrow) %v1925_v37, 8 }
  0xbd   : > { %v1020_v39 = vpop.permute.xlu1 %1019  ;;  %v1023_v40 = vpop.permute.xlu0 %1022 }
  0xbe   : > { %vm1062_vm7 = vcmp.eq.s32.totalorder %v1020_v39, %v2646_v1  ;;  %vm1063_vm8 = vcmp.eq.s32.totalorder %v1023_v40, %v2646_v1 }
  0xbf   : > { %v1927_v41 = vsel %vm1062_vm7, 1.0, %v2438_v4  ;;  %v1928_v43 = vsel %vm1063_vm8, 1.0, %v2438_v4  ;;  %vm2440_vm7 = vmmov 0   ;;  %vm1212_vm8 = vcmask 254976  }
  0xc0   : > { %1110 = vxpose.xlu1.b32.cont [2/16] (narrow) %v1926_v38, 8  ;;  %2153 = vmatprep.mubr.msk.f32.mxu1 %vm2440_vm7, %v2438_v4 }
  0xc1   : > { %v1026_v42 = vpop.permute.xlu1 %1025  ;;  %v1029_v44 = vpop.permute.xlu0 %1028 }
  0xc2   : > { %vm1064_vm9 = vcmp.eq.s32.totalorder %v1026_v42, %v2646_v1  ;;  %vm1065_vm10 = vcmp.eq.s32.totalorder %v1029_v44, %v2646_v1 }
  0xc3   : > { %v1929_v45 = vsel %vm1064_vm9, 1.0, %v2438_v4  ;;  %v1930_v47 = vsel %vm1065_vm10, 1.0, %v2438_v4  ;;  %vm2444_vm9 = vmmov (!%p1941_p5), 0  }
  0xc4   : > { %1111 = vxpose.xlu1.b32.cont [3/16] (narrow) %v1927_v41, 8 }
  0xc5   : > { %v1032_v46 = vpop.permute.xlu1 %1031  ;;  %v1035_v48 = vpop.permute.xlu0 %1034 }
  0xc6   : > { %vm1066_vm11 = vcmp.eq.s32.totalorder %v1032_v46, %v2646_v1  ;;  %vm1067_vm12 = vcmp.eq.s32.totalorder %v1035_v48, %v2646_v1 }
  0xc7   : > { %v1931_v49 = vsel %vm1066_vm11, 1.0, %v2438_v4  ;;  %v1932_v51 = vsel %vm1067_vm12, 1.0, %v2438_v4 }
  0xc8   : > { %1112 = vxpose.xlu1.b32.cont [4/16] (narrow) %v1928_v43, 8 }
  0xc9   : > { %v1038_v50 = vpop.permute.xlu1 %1037  ;;  %v1041_v52 = vpop.permute.xlu0 %1040 }
  0xca   : > { %vm1068_vm13 = vcmp.eq.s32.totalorder %v1038_v50, %v2646_v1  ;;  %vm1069_vm14 = vcmp.eq.s32.totalorder %v1041_v52, %v2646_v1 }
  0xcb   : > { %v1933_v53 = vsel %vm1068_vm13, 1.0, %v2438_v4  ;;  %v1934_v55 = vsel %vm1069_vm14, 1.0, %v2438_v4  ;;  %vm1240_vm13 = vcmask (!%p1941_p5), 1041408   ;;  %vm1236_vm14 = vcmask (!%p1941_p5), 15360  }
  0xcc   : > { %1113 = vxpose.xlu1.b32.cont [5/16] (narrow) %v1929_v45, 8 }
  0xcd   : > { %v1044_v54 = vpop.permute.xlu1 %1043  ;;  %v1047_v56 = vpop.permute.xlu0 %1046 }
  0xce   : > { %vm1070_vm15 = vcmp.eq.s32.totalorder %v1044_v54, %v2646_v1  ;;  %vm1071_vm0 = vcmp.eq.s32.totalorder %v1047_v56, %v2646_v1 }
  0xcf   : > { %v1935_v57 = vsel %vm1070_vm15, 1.0, %v2438_v4  ;;  %v1936_v59 = vsel %vm1071_vm0, 1.0, %v2438_v4 }
  0xd0   : > { %1114 = vxpose.xlu1.b32.cont [6/16] (narrow) %v1930_v47, 8 }
  0xd1   : > { %v1050_v58 = vpop.permute.xlu1 %1049  ;;  %v1053_v60 = vpop.permute.xlu0 %1052 }
  0xd2   : > { %vm1072_vm3 = vcmp.eq.s32.totalorder %v1050_v58, %v2646_v1  ;;  %vm1073_vm4 = vcmp.eq.s32.totalorder %v1053_v60, %v2646_v1 }
  0xd3   : > { %v1937_v61 = vsel %vm1072_vm3, 1.0, %v2438_v4  ;;  %v1938_v63 = vsel %vm1073_vm4, 1.0, %v2438_v4 }
  0xd4   : > { %1115 = vxpose.xlu1.b32.cont [7/16] (narrow) %v1931_v49, 8 }
  0xd5   : > { %v1056_v62 = vpop.permute.xlu1 %1055  ;;  %v1059_v2 = vpop.permute.xlu0 %1058 }
  0xd6   : > { %vm1074_vm5 = vcmp.eq.s32.totalorder %v1056_v62, %v2646_v1  ;;  %vm1075_vm6 = vcmp.eq.s32.totalorder %v1059_v2, %v2646_v1 }
  0xd7   : > { %v1939_v3 = vsel %vm1074_vm5, 1.0, %v2438_v4  ;;  %v1940_v5 = vsel %vm1075_vm6, 1.0, %v2438_v4 }
  0xd8   : > { %1116 = vxpose.xlu1.b32.cont [8/16] (narrow) %v1932_v51, 8 }
  0xdc   : > { %1117 = vxpose.xlu1.b32.cont [9/16] (narrow) %v1933_v53, 8 }
  0xe0   : > { %1118 = vxpose.xlu1.b32.cont [10/16] (narrow) %v1934_v55, 8 }
  0xe4   : > { %1119 = vxpose.xlu1.b32.cont [11/16] (narrow) %v1935_v57, 8 }
  0xe8   : > { %1120 = vxpose.xlu1.b32.cont [12/16] (narrow) %v1936_v59, 8 }
  0xec   : > { %1121 = vxpose.xlu1.b32.cont [13/16] (narrow) %v1937_v61, 8 }
  0xef   : > { %v2059_v6 = vpop.f32.mrb[0].mxu1 }
  0xf0   : > { %1122 = vxpose.xlu1.b32.cont [14/16] (narrow) %v1938_v63, 8  ;;  %v716_v7 = vpop.f32.mrb[1].mxu1 }
  0xf3   : > { %v2062_v8 = vpop.f32.mrb[2].mxu1 }
  0xf4   : > { %1123 = vxpose.xlu1.b32.cont [15/16] (narrow) %v1939_v3, 8  ;;  %v726_v10 = vpop.f32.mrb[3].mxu1 }
  0xf7   : > { %v2065_v11 = vpop.f32.mrb[4].mxu1 }
  0xf8   : > { %1124 = vxpose.xlu1.b32.end [16/16] (narrow) %v1940_v5, 8  ;;  %v736_v12 = vpop.f32.mrb[5].mxu1 }
  0xfb   : > { %v2068_v13 = vpop.f32.mrb[6].mxu1 }
  0xfc   : > { %v746_v14 = vpop.f32.mrb[7].mxu1 }
  0xff   : > { %v2071_v15 = vpop.f32.mrb[8].mxu1 }
 0x100   : > { %v756_v16 = vpop.f32.mrb[9].mxu1 }
 0x103   : > { %v2074_v17 = vpop.f32.mrb[10].mxu1 }
 0x104   : > { %v766_v18 = vpop.f32.mrb[11].mxu1 }
 0x107   : > { %v2077_v19 = vpop.f32.mrb[12].mxu1 }
 0x108   : > { %v776_v20 = vpop.f32.mrb[13].mxu1 }
 0x10b   : > { %v2729_v21 = vpop.f32.mrb[14].mxu1 }
 0x10c   : > { %v2731_v22 = vpop.f32.mrb[15].mxu1 }
 0x172   : > { %v2099_v23 = vpop.f32.mrb[0].mxu0 }
 0x173   : > { %v916_v25 = vadd.f32 %v2099_v23, %v2059_v6  ;;  %v910_v26 = vpop.f32.mrb[1].mxu0 }
 0x174   : > { %v911_v27 = vadd.f32 %v910_v26, %v716_v7  ;;  %v1321_v26 = vld [vmem:[%s2942_s1] sm:$0xff] (!%p1941_p5) }
 0x175   : > { %v997_v28 = vadd.f32 %v2737_v24, %v916_v25 }
 0x176   : > { %v996_v29 = vadd.f32 %v2737_v24, %v911_v27  ;;  %v2102_v30 = vpop.f32.mrb[2].mxu0  ;;  %v1322_v27 = vld [vmem:[%s2942_s1 + $0x8] sm:$0xff] (!%p1941_p5) }
 0x177   : > { %v926_v31 = vadd.f32 %v2102_v30, %v2062_v8  ;;  %v920_v32 = vpop.f32.mrb[3].mxu0  ;;  %v1324_v30 = vld [vmem:[%s2942_s1 + $0x18] sm:$0xff] (!%p1941_p5) }
 0x178   : > { %v2254_v33 = vpack.c.bf16 %v997_v28, %v996_v29  ;;  %v921_v34 = vadd.f32 %v920_v32, %v726_v10  ;;  %v1323_v28 = vld [vmem:[%s2942_s1 + $0x10] sm:$0xff] (!%p1941_p5)  ;;  %v2278_v29 = vpack.c.bf16 (!%p1941_p5), %v1322_v27, %v1321_v26  ;;  %v2443_v32 = vmov (!%p1941_p5), 0.0  }
 0x179   : > { %v999_v4 = vadd.f32 %v2737_v24, %v926_v31  ;;  %v1314_v31 = vld [vmem:[%s2947_s6] sm:$0xf] (!%p1941_p5)  ;;  %2182 = vmatprep.mubr.msk.f32.mxu0 (!%p1941_p5), %vm2444_vm9, %v2443_v32 }
 0x17a   : > { %v998_v35 = vadd.f32 %v2737_v24, %v921_v34  ;;  %v2105_v36 = vpop.f32.mrb[4].mxu0  ;;  %2255 = vmatpush3.bf16.msra.mxu1 %v2254_v33  ;;  %v2281_v33 = vpack.c.bf16 (!%p1941_p5), %v1324_v30, %v1323_v28  ;;  %v1325_v34 = vld [vmem:[%s2942_s1 + $0x20] sm:$0xff] (!%p1941_p5) }
 0x17b   : > { %v936_v37 = vadd.f32 %v2105_v36, %v2065_v11  ;;  %v930_v38 = vpop.f32.mrb[5].mxu0  ;;  %2256 = vmatprep.subr.bf16.mxu1 %v2439_v9  ;;  %v1327_v36 = vld [vmem:[%s2942_s1 + $0x30] sm:$0xff] (!%p1941_p5)  ;;  %v1951_v28 = vld [vmem:[%s2950_s9] ss:$0 sm:$0xff] (!%p1941_p5) }
 0x17c   : > { %v2257_v39 = vpack.c.bf16 %v999_v4, %v998_v35  ;;  %v931_v40 = vadd.f32 %v930_v38, %v736_v12  ;;  %v1326_v4 = vld [vmem:[%s2942_s1 + $0x28] sm:$0xff] (!%p1941_p5) }
 0x17d   : > { %v1001_v41 = vadd.f32 %v2737_v24, %v936_v37  ;;  %v2284_v35 = vpack.c.bf16 (!%p1941_p5), %v1326_v4, %v1325_v34  ;;  %v1328_v37 = vld [vmem:[%s2942_s1 + $0x38] sm:$0xff] (!%p1941_p5)  ;;  %v1952_v4 = vld [vmem:[%s2952_s11] ss:$0 sm:$0xff] (!%p1941_p5) }
 0x17e   : > { %v1000_v42 = vadd.f32 %v2737_v24, %v931_v40  ;;  %v2108_v43 = vpop.f32.mrb[6].mxu0  ;;  %2258 = vmatpush3.bf16.msra.mxu1 %v2257_v39  ;;  %v2287_v38 = vpack.c.bf16 (!%p1941_p5), %v1328_v37, %v1327_v36  ;;  %v1230_v39 = vadd.s32 (!%p1941_p5), 1, %v2646_v1  ;;  %v1227_v40 = vshrl.u32 (!%p1941_p5), %v494_v0, 7  ;;  %v1329_v0 = vld [vmem:[%s2946_s5] sm:$0xf] (!%p1941_p5) }
 0x17f   : > { %v946_v44 = vadd.f32 %v2108_v43, %v2068_v13  ;;  %v940_v45 = vpop.f32.mrb[7].mxu0  ;;  %2259 = vmatprep.subr.bf16.mxu1 %v2439_v9 }
 0x180   : > { %v2260_v46 = vpack.c.bf16 %v1001_v41, %v1000_v42  ;;  %v941_v47 = vadd.f32 %v940_v45, %v746_v14  ;;  %v1228_v41 = vmul.u32 (!%p1941_p5), 2, %v2646_v1  ;;  %v1231_v42 = vmul.u32 (!%p1941_p5), 2, %v1230_v39  ;;  %v1954_v39 = vld [vmem:[%s2954_s13] ss:$0 sm:$0xff] (!%p1941_p5) }
 0x181   : > { %v1003_v48 = vadd.f32 %v2737_v24, %v946_v44 }
 0x182   : > { %v1002_v49 = vadd.f32 %v2737_v24, %v941_v47  ;;  %v2111_v50 = vpop.f32.mrb[8].mxu0  ;;  %2261 = vmatpush3.bf16.msra.mxu1 %v2260_v46  ;;  %vm1229_vm10 = vcmp.ge.s32.totalorder (!%p1941_p5), %v1227_v40, %v1228_v41  ;;  %vm1232_vm11 = vcmp.lt.s32.totalorder (!%p1941_p5), %v1227_v40, %v1231_v42  ;;  %v1330_v47 = vld [vmem:[%s2943_s2] sm:$0xff] (!%p1941_p5) }
 0x183   : > { %v956_v51 = vadd.f32 %v2111_v50, %v2071_v15  ;;  %v950_v52 = vpop.f32.mrb[9].mxu0  ;;  %2262 = vmatprep.subr.bf16.mxu1 %v2439_v9  ;;  %vm1233_vm12 = vmand (!%p1941_p5), %vm1229_vm10, %vm1232_vm11  ;;  %v1490_v50 = vld [vmem:[%s2949_s8 + $0x8] sm:$0xff] (!%p1941_p5) }
 0x184   : > { %v2263_v53 = vpack.c.bf16 %v1003_v48, %v1002_v49  ;;  %v951_v54 = vadd.f32 %v950_v52, %v756_v16  ;;  %v1942_v46 = vsel (!%p1941_p5), %vm1233_vm12, 1.0, %v2443_v32  ;;  %v1491_v52 = vld [vmem:[%s2949_s8 + $0x10] sm:$0xff] (!%p1941_p5) }
 0x185   : > { %v1005_v55 = vadd.f32 %v2737_v24, %v956_v51 }
 0x186   : > { %v1004_v56 = vadd.f32 %v2737_v24, %v951_v54  ;;  %v2114_v57 = vpop.f32.mrb[10].mxu0  ;;  %2264 = vmatpush3.bf16.msra.mxu1 %v2263_v53  ;;  %v1492_v53 = vld [vmem:[%s2949_s8 + $0x18] sm:$0xff] (!%p1941_p5) }
 0x187   : > { %v966_v58 = vadd.f32 %v2114_v57, %v2074_v17  ;;  %v960_v59 = vpop.f32.mrb[11].mxu0  ;;  %2265 = vmatprep.subr.bf16.mxu1 %v2439_v9  ;;  %v2293_v54 = vpack.c.bf16 (!%p1941_p5), %v1492_v53, %v1491_v52 }
 0x188   : > { %v2266_v60 = vpack.c.bf16 %v1005_v55, %v1004_v56  ;;  %v961_v61 = vadd.f32 %v960_v59, %v766_v18  ;;  %v1649_v55 = vld [vmem:[%s2951_s10] sm:$0xff] (!%p1941_p5)  ;;  %v1650_v56 = vld [vmem:[%s2951_s10 + $0x8] sm:$0xff] (!%p1941_p5) }
 0x189   : > { %v1007_v62 = vadd.f32 %v2737_v24, %v966_v58  ;;  %v2302_v57 = vpack.c.bf16 (!%p1941_p5), %v1650_v56, %v1649_v55 }
 0x18a   : > { %v1006_v63 = vadd.f32 %v2737_v24, %v961_v61  ;;  %v2117_v2 = vpop.f32.mrb[12].mxu0  ;;  %2267 = vmatpush3.bf16.msra.mxu1 %v2266_v60  ;;  %v1485_v61 = vld [vmem:[%s2948_s7] sm:$0xff] (!%p1941_p5) }
 0x18b   : > { %v976_v3 = vadd.f32 %v2117_v2, %v2077_v19  ;;  %v970_v5 = vpop.f32.mrb[13].mxu0  ;;  %2268 = vmatprep.subr.bf16.mxu1 %v2439_v9  ;;  %v1125_v19 = vpop.trf.xlu1  ;;  %v1948_v2 = vld [vmem:[%s2944_s3] ss:$0 sm:$0xff] (!%p1941_p5) }
 0x18c   : > { %v2269_v6 = vpack.c.bf16 %v1007_v62, %v1006_v63  ;;  %v971_v7 = vadd.f32 %v970_v5, %v776_v20  ;;  %v1108_v20 = vld [vmem:[#allocation2] sm:$0x3]  ;;  %v1486_v62 = vld [vmem:[%s2948_s7 + $0x8] sm:$0xff] (!%p1941_p5) }
 0x18d   : > { %v1009_v8 = vadd.f32 %v2737_v24, %v976_v3 }
 0x18e   : > { %v1008_v10 = vadd.f32 %v2737_v24, %v971_v7  ;;  %v2120_v11 = vpop.f32.mrb[14].mxu0  ;;  %2270 = vmatpush3.bf16.msra.mxu1 %v2269_v6  ;;  %v2296_v7 = vpack.c.bf16 (!%p1941_p5), %v1486_v62, %v1485_v61 }
 0x18f   : > { %v986_v12 = vadd.f32 %v2120_v11, %v2729_v21  ;;  %v980_v13 = vpop.f32.mrb[15].mxu0  ;;  %2271 = vmatprep.subr.bf16.mxu1 %v2439_v9  ;;  %v1488_v11 = vld [vmem:[%s2948_s7 + $0x18] sm:$0xff] (!%p1941_p5) }
 0x190   : > { %v2272_v14 = vpack.c.bf16 %v1009_v8, %v1008_v10  ;;  %v981_v15 = vadd.f32 %v980_v13, %v2731_v22  ;;  %v1219_v22 = vld [vmem:[%s2945_s4] sm:$0x3] (!%p1941_p5)  ;;  %v1487_v10 = vld [vmem:[%s2948_s7 + $0x10] sm:$0xff] (!%p1941_p5) }
 0x191   : > { %v1011_v16 = vadd.f32 %v2737_v24, %v986_v12  ;;  %v2299_v12 = vpack.c.bf16 (!%p1941_p5), %v1488_v11, %v1487_v10  ;;  %v1651_v13 = vld [vmem:[%s2951_s10 + $0x10] sm:$0xff] (!%p1941_p5) }
 0x192   : > { %v1010_v17 = vadd.f32 %v2737_v24, %v981_v15  ;;  %2273 = vmatpush3.bf16.msra.mxu1 %v2272_v14  ;;  %v2441_v24 = vmov (!%p1941_p5), 0   ;;  %v1652_v14 = vld [vmem:[%s2951_s10 + $0x18] sm:$0xff] (!%p1941_p5) }
 0x193   : > { %2274 = vmatprep.subr.bf16.mxu1 %v2439_v9  ;;  %2396 = vset.pattern.permute.xlu0 (!%p1941_p5), %v2441_v24  ;;  %v2442_v9 = vmov (!%p1941_p5), 0.0|0.0   ;;  %v2305_v15 = vpack.c.bf16 (!%p1941_p5), %v1652_v14, %v1651_v13 }
 0x194   : > { %v2275_v18 = vpack.c.bf16 %v1011_v16, %v1010_v17  ;;  %2277 = vmatprep.subr.bf16.mxu0 (!%p1941_p5), %v2442_v9  ;;  %1222 = vperm.xlu0 (!%p1941_p5), %2396, %v1219_v22   ;;  %v1653_v16 = vld [vmem:[%s2951_s10 + $0x20] sm:$0xff] (!%p1941_p5)  ;;  %v1654_v17 = vld [vmem:[%s2951_s10 + $0x28] sm:$0xff] (!%p1941_p5) }
 0x195   : > { %2279 = vmatpush3.bf16.msra.mxu0 (!%p1941_p5), %v2278_v29 }
 0x196   : > { %2276 = vmatpush3.bf16.msra.mxu1 %v2275_v18  ;;  %2280 = vmatprep.subr.bf16.mxu0 (!%p1941_p5), %v2442_v9  ;;  %v2308_v18 = vpack.c.bf16 (!%p1941_p5), %v1654_v17, %v1653_v16 }
 0x197   : > { %2156 = vmatprep.subr.mxu1 (!%p1941_p5), %v2443_v32 }
 0x198   : > { %1316 = vperm.xlu0 (!%p1941_p5), %2396, %v1314_v31  }
 0x199   : > { %2154 = vmatmul.mubr.f32.vlgmr.msra.gmra.mrb[16].mxu1 %v1125_v19  ;;  %2282 = vmatpush3.bf16.msra.mxu0 (!%p1941_p5), %v2281_v33  ;;  %v1655_v19 = vld [vmem:[%s2951_s10 + $0x30] sm:$0xff] (!%p1941_p5) }
 0x19a   : > { %2158 = vmatprep.mubr.msk.f32.mxu1 (!%p1941_p5), %vm2444_vm9, %v2443_v32  ;;  %2283 = vmatprep.subr.bf16.mxu0 (!%p1941_p5), %v2442_v9  ;;  %v1740_v33 = vld [vmem:[%s2953_s12 + $0x10] sm:$0xff] (!%p1941_p5) }
 0x19d   : > { %2285 = vmatpush3.bf16.msra.mxu0 (!%p1941_p5), %v2284_v35 }
 0x19e   : > { %2286 = vmatprep.subr.bf16.mxu0 (!%p1941_p5), %v2442_v9 }
 0x1a1   : > { %2288 = vmatpush3.bf16.msra.mxu0 (!%p1941_p5), %v2287_v38 }
 0x1a2   : > { %2301 = vmatprep.subr.bf16.mxu0 (!%p1941_p5), %v2442_v9 }
 0x213   : > { %v1223_v44 = vpop.permute.xlu0 (!%p1941_p5), %1222 }
 0x217   : > { %v1317_v48 = vpop.permute.xlu0 (!%p1941_p5), %1316 }
 0x218   : > { %vm1318_vm15 = vcmp.eq.s32.totalorder (!%p1941_p5), %v1317_v48, %v2646_v1  ;;  %v1489_v1 = vld [vmem:[%s2949_s8] sm:$0xff] (!%p1941_p5) }
 0x219   : > { %v1945_v49 = vsel (!%p1941_p5), %vm1318_vm15, 1.0, %v2443_v32  ;;  %v2290_v51 = vpack.c.bf16 (!%p1941_p5), %v1490_v50, %v1489_v1 }
 0x21a   : > { %2183 = vmatmul.mubr.msk.f32.vlgmr.msra.gmra.mrb[0].mxu0 (!%p1941_p5), %vm795_vm2, %v1945_v49 }
 0x21b   : > { %2223 = vmatprep.mubr.msk.f32.mxu0 (!%p1941_p5), %vm2444_vm9, %v2443_v32  ;;  %2303 = vmatpush3.bf16.msra.mxu0 (!%p1941_p5), %v2302_v57 }
 0x21c   : > { %2304 = vmatprep.subr.bf16.mxu0 (!%p1941_p5), %v2442_v9 }
 0x21f   : > { %2306 = vmatpush3.bf16.msra.mxu0 (!%p1941_p5), %v2305_v15 }
 0x220   : > { %2307 = vmatprep.subr.bf16.mxu0 (!%p1941_p5), %v2442_v9 }
 0x223   : > { %2309 = vmatpush3.bf16.msra.mxu0 (!%p1941_p5), %v2308_v18 }
 0x224   : > { %2310 = vmatprep.subr.bf16.mxu0 (!%p1941_p5), %v2442_v9 }
 0x269   : > { %1217 = sbr.rel (%p1941_p5) target bundleno = 1511 (0x5e7), region = 84 }
 0x26c   : > { %v1207_v23 = vpop.f32.mrb[16].mxu1 }
 0x26d   : > { %v1211_v21 = vadd.f32 %v1207_v23, %v1108_v20  ;;  %v2155_v25 = vpop.f32.mrb[17].mxu1  ;;  %v1656_v20 = vld [vmem:[%s2951_s10 + $0x38] sm:$0xff] (!%p1941_p5) }
 0x26e   : > { %v2311_v23 = vpack.c.bf16 (!%p1941_p5), %v1656_v20, %v1655_v19  ;;  %v1739_v25 = vld [vmem:[%s2953_s12 + $0x8] sm:$0xff] (!%p1941_p5) }
 0x26f   : > { %1213 = vst.msk [vmem:[#allocation2] sm:$0x3] %vm1212_vm8, %v1211_v21  ;;  %v1738_v21 = vld [vmem:[%s2953_s12] sm:$0xff] (!%p1941_p5) }
 0x270   : > { %2312 = vmatpush3.bf16.msra.mxu0 %v2311_v23  ;;  %v2314_v22 = vpack.c.bf16 %v1739_v25, %v1738_v21 }
 0x276   : > { %v1218_v43 = vld [vmem:[#allocation2] sm:$0x3] }
 0x277   : > { %v1225_v45 = vmul.f32 %v1223_v44, %v1218_v43 }
 0x279   : > { %2157 = vmatpush3.msk.msra.mxu1 %vm1240_vm13, %v1225_v45 }
 0x27a   : > { %2159 = vmatmul.mubr.msk.f32.vlgmr.msra.gmra.mrb[0].mxu1 %vm1236_vm14, %v1942_v46  ;;  %2161 = vmatprep.subr.mxu1 %v2443_v32 }
 0x27b   : > { %2162 = vmatpush3.msra.mxu1 %v1330_v47  ;;  %2163 = vmatprep.mubr.msk.f32.mxu1 %vm2444_vm9, %v2443_v32 }
 0x27c   : > { %2289 = vmatprep.subr.bf16.mxu1 %v2442_v9 }
 0x27e   : > { %2164 = vmatmul.mubr.msk.f32.vlgmr.msra.gmra.mrb[2].mxu1 %vm601_vm1, %v1329_v0  ;;  %vm1493_vm1 = vcmask 261120  }
 0x27f   : > { %2193 = vmatprep.mubr.msk.f32.mxu1 %vm2444_vm9, %v2443_v32  ;;  %2291 = vmatpush3.bf16.msra.mxu1 %v2290_v51 }
 0x280   : > { %2292 = vmatprep.subr.bf16.mxu1 %v2442_v9 }
 0x283   : > { %2294 = vmatpush3.bf16.msra.mxu1 %v2293_v54 }
 0x284   : > { %2295 = vmatprep.subr.bf16.mxu1 %v2442_v9 }
 0x2ed   : > { %v1473_v60 = vpop.f32.mrb[0].mxu0 }
 0x2ee   : > { %v2184_v3 = vpop.f32.mrb[1].mxu0 }
 0x34d   : > { %v1310_v58 = vpop.f32.mrb[0].mxu1 }
 0x34e   : > { %v2160_v59 = vpop.f32.mrb[1].mxu1 }
 0x351   : > { %v1400_v63 = vpop.f32.mrb[2].mxu1 }
 0x352   : > { %v1474_v5 = vadd.f32 %v1473_v60, %v1400_v63  ;;  %v2165_v6 = vpop.f32.mrb[3].mxu1 }
 0x354   : > { %v1484_v8 = vadd.f32 %v1948_v2, %v1474_v5 }
 0x356   : > { %2194 = vmatmul.mubr.msk.f32.vlgmr.msra.gmra.mrb[4].mxu1 %vm1493_vm1, %v1484_v8 }
 0x357   : > { %2297 = vmatpush3.bf16.msra.mxu1 %v2296_v7  ;;  %2204 = vmatprep.mubr.msk.f32.mxu1 %vm2444_vm9, %v2443_v32 }
 0x358   : > { %2298 = vmatprep.subr.bf16.mxu1 %v2442_v9 }
 0x35b   : > { %2300 = vmatpush3.bf16.msra.mxu1 %v2299_v12 }
 0x35c   : > { %2313 = vmatprep.subr.bf16.mxu1 %v2442_v9 }
 0x35e   : > { %2205 = vmatmul.mubr.msk.f32.vlgmr.msra.gmra.mrb[6].mxu1 %vm1493_vm1, %v1310_v58 }
 0x35f   : > { %2234 = vmatprep.mubr.msk.f32.mxu1 %vm2444_vm9, %v2443_v32  ;;  %2315 = vmatpush3.bf16.msra.mxu1 %v2314_v22 }
 0x360   : > { %2316 = vmatprep.subr.bf16.mxu1 %v2442_v9  ;;  %v1741_v9 = vld [vmem:[%s2953_s12 + $0x18] sm:$0xff] }
 0x361   : > { %v2317_v34 = vpack.c.bf16 %v1741_v9, %v1740_v33 }
 0x363   : > { %2318 = vmatpush3.bf16.msra.mxu1 %v2317_v34 }
 0x429   : > { %v1563_v24 = vpop.f32.mrb[4].mxu1 }
 0x42a   : > { %v2195_v26 = vpop.f32.mrb[5].mxu1 }
 0x431   : > { %v1636_v27 = vpop.f32.mrb[6].mxu1 }
 0x432   : > { %v1637_v29 = vadd.f32 %v1636_v27, %v1563_v24  ;;  %v2206_v30 = vpop.f32.mrb[7].mxu1 }
 0x434   : > { %v1647_v31 = vadd.f32 %v1951_v28, %v1637_v29 }
 0x436   : > { %v1648_v32 = vmax.f32 %v1647_v31, 0.0 }
 0x438   : > { %2224 = vmatmul.mubr.msk.f32.vlgmr.msra.gmra.mrb[2].mxu0 %vm795_vm2, %v1648_v32 }
 0x50b   : > { %v1733_v35 = vpop.f32.mrb[2].mxu0 }
 0x50c   : > { %v1734_v36 = vadd.f32 %v1952_v4, %v1733_v35  ;;  %v2225_v37 = vpop.f32.mrb[3].mxu0 }
 0x50e   : > { %v1737_v38 = vmax.f32 %v1734_v36, 0.0 }
 0x510   : > { %2235 = vmatmul.mubr.msk.f32.vlgmr.msra.gmra.mrb[8].mxu1 %vm1493_vm1, %v1737_v38 }
 0x5e3   : > { %v1818_v40 = vpop.f32.mrb[8].mxu1 }
 0x5e4   : > { %v1819_v41 = vadd.f32 %v1954_v39, %v1818_v40  ;;  %v2236_v42 = vpop.f32.mrb[9].mxu1 }
 0x5e6   : > { %1822 = vst [vmem:[#allocation3] sm:$0xf] %v1819_v41 }
 0x5e7 PF: > { %p2371_p6 = scmp.eq.s32.totalorder %s2527_s30, 1  ;;  %s2445_s28 = smov [#allocation3]  }
 0x5e8   : > { %s1830_s15 = sshll.u32 %s2445_s28, 4  ;;  %s1831_s15 = int_to_ptr.vmem [resolvable:$true] %s1830_s15 }
 0x5e9   : > { %s2397_s16 = scalar_lea.vmem %s1831_s15, 64  ;;  %p2404_p10 = scmp.lt.s32.totalorder %s1831_s15, %s1831_s15 }
 0x5ea   : > { %p2398_p7 = scmp.ne.s32.totalorder %s1831_s15, %s2397_s16  ;;  %p2405_p11 = scmp.lt.s32.totalorder %s2397_s16, %s2397_s16 }
 0x5ec   : > { %p2399_p8 = pnand %p2398_p7, %p2371_p6  ;;  %p2406_p12 = por %p2405_p11, %p2404_p10 }
 0x5ee   : > { %p2400_p9 = pneg %p2399_p8 }
 0x5f0   : > { %p2407_p13 = pnand %p2406_p12, %p2400_p9 }
 0x5f2   : > { %2410 = shalt.err (!%p2407_p13)
}
 0x5f3   : > { %s2411_s20 = scalar_lea.hbm %s2955_s14, 64 }
 0x5f4   : > { %p2412_p0 = scmp.ne.s32.totalorder %s2955_s14, %s2411_s20  ;;  %p2417_p3 = scmp.lt.u32.totalorder %s2411_s20, %s2955_s14 }
 0x5f6   : > { %p2413_p1 = pnand %p2412_p0, %p2371_p6 }
 0x5f8   : > { %p2414_p2 = pneg %p2413_p1 }
 0x5fa   : > { %p2419_p4 = pnand %p2417_p3, %p2414_p2 }
 0x5fc   : > { %2422 = shalt.err (!%p2419_p4)
}
 0x5fd   : > { %2368 = dma.vmem_to_hbm [thread:$0]  (%p2371_p6), %s1831_s15, 64, %s2955_s14, [#allocation4]  }
 0x5fe   : > { %2428 = dma.done.wait (%p2371_p6), [#allocation4], 64  }
 0x5ff   : > { %2430 = vsyncadd (%p2371_p6), [#allocation4], 4294967232 }
 0x600 PF: > { %s25_s29 = sadd.s32 1, %s2433_s29  }
 0x601   : > { %p22_p5 = scmp.ge.s32.totalorder %s25_s29, 4  }
 0x603   :  { %24 = sbr.rel (!%p22_p5) target bundleno = 1 (0x1), region = 111 }
 0x60a   :  { %1843 = vsyncpa [#allocation4], 1 }
 0x60b   :  { %1845 = vsyncpa [#allocation4 + $0x1], 1 }

</bundles_post_ra>
